<compile_context>
chip_gen: v5e
topology: v5e:2x2
jax: 0.10.0
libtpu: 0.0.40
codegen_flags: <defaults>
</compile_context>

<pallas_src>
import functools

import jax
import jax.numpy as jnp
from jax import lax
from jax.experimental import pallas as pl
from jax.experimental.pallas import tpu as pltpu


def _round_up(x, m):
    return (x + m - 1) // m * m


def _cdiv(a, b):
    return (a + b - 1) // b


def _vmem_limit_bytes():
    # ~75% of physical VMEM: 96 MiB on v5e/v6e (128 MiB), 48 MiB on v7x (64 MiB).
    try:
        cap = int(pltpu.get_tpu_info().vmem_capacity_bytes)
    except Exception:
        cap = 64 * 1024 * 1024  # conservative fallback (v7x-sized)
    return (cap * 3) // 4


# ----------------------------------------------------------------------------
# Kernel 1: row-tiled 2D convolution (no bias), fused with per-channel partial
# sum / sum-of-squares for BatchNorm statistics.  Grid = (N, num_row_tiles),
# both axes "parallel" (partial stats remove the cross-step dependency).
# ----------------------------------------------------------------------------
def conv2d_stats_kernel(x_ref, w_ref, o_ref, psum_ref, pssq_ref, acc_ref, *,
                        kh_taps, kw_taps, th, h_valid, need_row_mask):
    # x_ref:    (1, Hin, Win, Ceff)   full (padded / W-im2col'd) image, resident across h-tiles
    # w_ref:    (KH*KW*Cin, Cout_p)   flat lane-dense weight (row order: kh, kw, cin)
    # o_ref:    (1, th, W_out, Cout_p) conv output tile (activation dtype)
    # psum_ref: (1, 1, 1, Cout_p)     per-step partial channel sum (f32)
    # pssq_ref: (1, 1, 1, Cout_p)     per-step partial channel sum of squares (f32)
    # acc_ref:  (th*W_out, Cout_p)    f32 VMEM scratch accumulator
    h_idx = pl.program_id(1)
    _, _, w_out, cout_p = o_ref.shape
    ceff = x_ref.shape[3]
    rows = th * w_out
    row0 = pl.multiple_of(h_idx * th, th)

    first = True
    for kh in range(kh_taps):
        for kw in range(kw_taps):
            # Dynamic offset only along the leading (row) dim; lane dim untouched.
            xs = x_ref[0, pl.ds(row0 + kh, th), kw:kw + w_out, :].reshape(rows, ceff)
            tap = kh * kw_taps + kw
            wk = w_ref[tap * ceff:(tap + 1) * ceff, :]                    # (Ceff, Cout_p)
            contrib = jnp.dot(xs, wk, preferred_element_type=jnp.float32)
            if first:
                acc_ref[...] = contrib
                first = False
            else:
                acc_ref[...] += contrib

    acc = acc_ref[...]
    o_ref[0] = acc.reshape(th, w_out, cout_p).astype(o_ref.dtype)

    # Partial BN statistics from the exact f32 accumulator.  For the ragged last
    # row tile, rows >= H_out are computed-but-dropped by Pallas' boundary handling;
    # they must be excluded from the statistics.
    if need_row_mask:
        n_valid_rows = jnp.minimum(th, h_valid - row0) * w_out
        idx = lax.broadcasted_iota(jnp.int32, (rows, 1), 0)
        accv = jnp.where(idx < n_valid_rows, acc, 0.0)
    else:
        accv = acc
    psum_ref[0, 0] = jnp.sum(accv, axis=0, keepdims=True)
    pssq_ref[0, 0] = jnp.sum(accv * acc, axis=0, keepdims=True)


# ----------------------------------------------------------------------------
# Kernel 2: streaming per-channel affine + ReLU (BatchNorm folded into scale/shift).
# Output last dim is exactly Cout (slice fused here; no separate XLA slice pass).
# ----------------------------------------------------------------------------
def affine_relu_kernel(x_ref, scale_ref, shift_ref, o_ref):
    x = x_ref[...]                                           # (1, THa, W_out, Cout_p)
    scale = scale_ref[...].reshape(1, 1, 1, -1)
    shift = shift_ref[...].reshape(1, 1, 1, -1)
    y = jnp.maximum(x.astype(jnp.float32) * scale + shift, 0.0)
    cout = o_ref.shape[3]
    o_ref[...] = y[..., :cout].astype(o_ref.dtype)


# ----------------------------------------------------------------------------
# Wrapper
# ----------------------------------------------------------------------------
def basic_conv2d(x_nchw, w_oihw, gamma, beta, *, padding=1, eps=1e-3):
    N, Cin, H, W = x_nchw.shape
    Cout, Cin_w, KH, KW = w_oihw.shape
    assert Cin_w == Cin
    out_dtype = x_nchw.dtype
    Cout_p = _round_up(Cout, 128)                            # lane-dense channels inside kernels

    H_out = H + 2 * padding - KH + 1                         # stride 1
    W_out = W + 2 * padding - KW + 1

    # Conv row tiling: ~512 output pixels per matmul M tile (ragged last tile handled).
    TH = max(1, min(H_out, _cdiv(512, W_out)))
    nH = _cdiv(H_out, TH)

    # NCHW -> NHWC.
    # TODO(synk): keep the surrounding network channels-last to drop the entry/exit
    # transposes, and fold the zero padding into the kernel (index_map + edge masks)
    # for the per-tap (large-Cin) path to save another full HBM pass.
    x_nhwc = jnp.transpose(x_nchw, (0, 2, 3, 1))
    extra_h = max(0, nH * TH + KH - 1 - (H + 2 * padding))   # keep ragged-tile reads in bounds
    x_pad = jnp.pad(x_nhwc, ((0, 0), (padding, padding + extra_h),
                             (padding, padding), (0, 0)))

    # Small-Cin layers: fold the KW taps into the contraction dim (K = KW*Cin) via a
    # wrapper-side W-axis im2col; large-Cin layers keep the per-tap form (K = Cin).
    merge_kw = Cin < 128
    if merge_kw:
        x_in = jnp.concatenate(
            [x_pad[:, :, kw:kw + W_out, :] for kw in range(KW)], axis=-1)
        kw_taps = 1
    else:
        x_in = x_pad
        kw_taps = KW
    kh_taps = KH
    Hin, Win, Ceff = x_in.shape[1], x_in.shape[2], x_in.shape[3]

    # OIHW -> flat (KH*KW*Cin, Cout_p): dense 2D lane-dense weight (row order kh, kw, cin).
    w_flat = jnp.transpose(w_oihw, (2, 3, 1, 0)).reshape(KH * KW * Cin, Cout)
    w_flat = jnp.pad(w_flat, ((0, 0), (0, Cout_p - Cout))).astype(x_in.dtype)

    vmem_limit = _vmem_limit_bytes()

    conv_kernel = functools.partial(
        conv2d_stats_kernel, kh_taps=kh_taps, kw_taps=kw_taps, th=TH,
        h_valid=H_out, need_row_mask=(H_out % TH) != 0)

    conv_out, psum, pssq = pl.pallas_call(
        conv_kernel,
        out_shape=(
            # Intermediate stored in the activation dtype (bf16 when the net is bf16);
            # BN stats still come from the f32 accumulator inside the kernel.
            jax.ShapeDtypeStruct((N, H_out, W_out, Cout_p), out_dtype),
            jax.ShapeDtypeStruct((N, nH, 1, Cout_p), jnp.float32),
            jax.ShapeDtypeStruct((N, nH, 1, Cout_p), jnp.float32),
        ),
        grid_spec=pltpu.PrefetchScalarGridSpec(
            num_scalar_prefetch=0,
            grid=(N, nH),
            in_specs=[
                # Whole (padded) image per batch element; index_map is constant across the
                # h axis so it stays resident (fetched once per n), only the output tiles.
                pl.BlockSpec((1, Hin, Win, Ceff), lambda n, h: (n, 0, 0, 0)),
                pl.BlockSpec((KH * KW * Cin, Cout_p), lambda n, h: (0, 0)),
            ],
            out_specs=(
                pl.BlockSpec((1, TH, W_out, Cout_p), lambda n, h: (n, h, 0, 0)),
                pl.BlockSpec((1, 1, 1, Cout_p), lambda n, h: (n, h, 0, 0)),
                pl.BlockSpec((1, 1, 1, Cout_p), lambda n, h: (n, h, 0, 0)),
            ),
            scratch_shapes=[pltpu.VMEM((TH * W_out, Cout_p), jnp.float32)],
        ),
        compiler_params=pltpu.CompilerParams(
            dimension_semantics=("parallel", "parallel"),    # both v7x TCs usable
            vmem_limit_bytes=vmem_limit,
        ),
    )(x_in, w_flat)

    # BatchNorm (training-mode batch statistics, biased variance, eps): reduce the tiny
    # per-step partials in plain JAX and fold gamma/beta into a single scale/shift.
    # NOTE: E[x^2]-E[x]^2 in f32 can lose precision for huge, large-magnitude activations;
    # partials are per-tile f32 sums which keeps the cancellation modest.
    count = jnp.float32(N * H_out * W_out)
    ch_sum = jnp.sum(psum, axis=(0, 1, 2))                   # (Cout_p,)
    ch_ssq = jnp.sum(pssq, axis=(0, 1, 2))
    mean = ch_sum / count
    var = jnp.maximum(ch_ssq / count - mean * mean, 0.0)     # biased variance (training)
    inv_std = lax.rsqrt(var + eps)
    gamma_p = jnp.pad(gamma.astype(jnp.float32), (0, Cout_p - Cout), constant_values=1.0)
    beta_p = jnp.pad(beta.astype(jnp.float32), (0, Cout_p - Cout))
    scale = (gamma_p * inv_std).reshape(1, Cout_p)
    shift = (beta_p - mean * gamma_p * inv_std).reshape(1, Cout_p)

    # Streaming affine + ReLU epilogue with large (~2 MiB) row tiles, cdiv grid.
    THa = max(1, min(H_out, (2 * 1024 * 1024) // max(1, W_out * Cout_p * 4)))
    nHa = _cdiv(H_out, THa)
    out_nhwc = pl.pallas_call(
        affine_relu_kernel,
        out_shape=jax.ShapeDtypeStruct((N, H_out, W_out, Cout), out_dtype),
        grid_spec=pltpu.PrefetchScalarGridSpec(
            num_scalar_prefetch=0,
            grid=(N, nHa),
            in_specs=[
                pl.BlockSpec((1, THa, W_out, Cout_p), lambda n, h: (n, h, 0, 0)),
                pl.BlockSpec((1, Cout_p), lambda n, h: (0, 0)),
                pl.BlockSpec((1, Cout_p), lambda n, h: (0, 0)),
            ],
            # Last dim exactly Cout: fuses the channel-unpad slice into this kernel
            # (masked tail stores only when Cout % 128 != 0).
            out_specs=pl.BlockSpec((1, THa, W_out, Cout), lambda n, h: (n, h, 0, 0)),
        ),
        compiler_params=pltpu.CompilerParams(
            dimension_semantics=("parallel", "parallel"),
            vmem_limit_bytes=vmem_limit,
        ),
    )(conv_out, scale, shift)

    # Back to PyTorch's NCHW convention.
    return jnp.transpose(out_nhwc, (0, 3, 1, 2))


# ----------------------------------------------------------------------------
# Pure-JAX reference for the exact semantics.
# ----------------------------------------------------------------------------
def basic_conv2d_ref(x_nchw, w_oihw, gamma, beta, *, padding=1, eps=1e-3):
    conv = lax.conv_general_dilated(
        x_nchw, w_oihw, window_strides=(1, 1),
        padding=[(padding, padding), (padding, padding)],
        dimension_numbers=("NCHW", "OIHW", "NCHW"))
    mean = jnp.mean(conv, axis=(0, 2, 3), keepdims=True)
    var = jnp.mean((conv - mean) ** 2, axis=(0, 2, 3), keepdims=True)  # biased (training)
    y = (conv - mean) * lax.rsqrt(var + eps)
    y = y * gamma.reshape(1, -1, 1, 1) + beta.reshape(1, -1, 1, 1)
    return jnp.maximum(y, 0.0)


def _run_case(key, N, Cin, H, W, Cout, KH=3, KW=3, padding=1, rtol=1e-4, atol=1e-4):
    k_x, k_w = jax.random.split(key)
    x = jax.random.normal(k_x, (N, Cin, H, W), dtype=jnp.float32)
    fan_in = Cin * KH * KW
    w = jax.random.normal(k_w, (Cout, Cin, KH, KW), dtype=jnp.float32) * (2.0 / fan_in) ** 0.5
    gamma = jnp.linspace(0.5, 1.5, Cout, dtype=jnp.float32)
    beta = jnp.linspace(-0.2, 0.2, Cout, dtype=jnp.float32)

    out = basic_conv2d(x, w, gamma, beta, padding=padding, eps=1e-3)
    out = jax.block_until_ready(out)
    ref = basic_conv2d_ref(x, w, gamma, beta, padding=padding, eps=1e-3)

    assert out.shape == ref.shape, (out.shape, ref.shape)
    assert jnp.allclose(out, ref, rtol=rtol, atol=atol), (
        f"mismatch N={N} Cin={Cin} H={H} W={W} Cout={Cout}: "
        f"max abs err {float(jnp.max(jnp.abs(out - ref)))}")


if __name__ == "__main__":
    key = jax.random.PRNGKey(0)
    k1, k2, k3 = jax.random.split(key, 3)

    # 1) Small baseline case (merged-KW path, single row tile).
    _run_case(k1, N=2, Cin=4, H=16, W=16, Cout=8, rtol=1e-4, atol=1e-4)

    # 2) Ragged row tiles (H=35 not divisible by the row tile): exercises the
    #    boundary masking of the BN statistics and multi-tile pipelining.
    _run_case(k2, N=2, Cin=8, H=35, W=35, Cout=16, rtol=1e-3, atol=1e-3)

    # 3) Large-Cin per-tap path (Cin >= 128).  Looser tolerance: long f32 dot
    #    reductions accumulate differently on the MXU than lax.conv's reference.
    _run_case(k3, N=1, Cin=160, H=17, W=17, Cout=32, rtol=5e-3, atol=5e-3)

    print("KERNEL_OK")
</pallas_src>

<mosaic_0001>
module attributes {stable_mosaic.version = 11 : i64} {
  func.func @conv2d_stats_kernel(%arg0: i32, %arg1: i32, %arg2: memref<1x18x16x12xf32, #tpu.memory_space<vmem>>, %arg3: memref<36x128xf32, #tpu.memory_space<vmem>>, %arg4: memref<1x16x16x128xf32, #tpu.memory_space<vmem>>, %arg5: memref<1x1x1x128xf32, #tpu.memory_space<vmem>>, %arg6: memref<1x1x1x128xf32, #tpu.memory_space<vmem>>, %arg7: memref<256x128xf32, #tpu.memory_space<vmem>>) attributes {dimension_semantics = [#tpu.dimension_semantics<parallel>, #tpu.dimension_semantics<parallel>], iteration_bounds = array<i64: 2, 1>, scalar_prefetch = 0 : i64, scratch_operands = 1 : i64, tpu.core_type = #tpu.core_type<tc>, window_params = [{transform_indices = @transform_0, window_bounds = array<i64: 1, 18, 16, 12>}, {pipeline_mode = #tpu.pipeline_mode<synchronous>, transform_indices = @transform_1, window_bounds = array<i64: 36, 128>}, {transform_indices = @transform_2, window_bounds = array<i64: 1, 16, 16, 128>}, {transform_indices = @transform_3, window_bounds = array<i64: 1, 1, 1, 128>}, {transform_indices = @transform_4, window_bounds = array<i64: 1, 1, 1, 128>}]} {
    %c16_i32 = arith.constant 16 : i32
    %0 = arith.muli %arg1, %c16_i32 : i32
    %1 = tpu.assume_multiple %0, 16 : i32
    %c0_i32 = arith.constant 0 : i32
    %2 = arith.addi %1, %c0_i32 : i32
    %c0 = arith.constant 0 : index
    %3 = arith.index_cast %2 : i32 to index
    %c0_0 = arith.constant 0 : index
    %c0_1 = arith.constant 0 : index
    %4 = vector.load %arg2[%c0, %3, %c0_0, %c0_1] : memref<1x18x16x12xf32, #tpu.memory_space<vmem>>, vector<1x16x16x12xf32>
    %5 = vector.shape_cast %4 : vector<1x16x16x12xf32> to vector<16x16x12xf32>
    %6 = vector.shape_cast %5 : vector<16x16x12xf32> to vector<256x12xf32>
    %c0_2 = arith.constant 0 : index
    %c0_3 = arith.constant 0 : index
    %7 = vector.load %arg3[%c0_2, %c0_3] : memref<36x128xf32, #tpu.memory_space<vmem>>, vector<12x128xf32>
    %cst = arith.constant dense<0.000000e+00> : vector<256x128xf32>
    %8 = tpu.matmul %6, %7, %cst {dimension_numbers = #tpu.dot_dimension_numbers<[1], [0], [0], [1], [0, 0, 1, 1], [], []>} : vector<256x12xf32>, vector<12x128xf32>, vector<256x128xf32> -> vector<256x128xf32>
    %c0_4 = arith.constant 0 : index
    %c0_5 = arith.constant 0 : index
    %9 = vector.load %arg7[%c0_4, %c0_5] : memref<256x128xf32, #tpu.memory_space<vmem>>, vector<256x128xf32>
    tpu.vector_store %arg7[%c0_4, %c0_5], %8 {strides = array<i32>} : memref<256x128xf32, #tpu.memory_space<vmem>>, vector<256x128xf32>,
    %c1_i32 = arith.constant 1 : i32
    %10 = arith.addi %1, %c1_i32 : i32
    %c0_6 = arith.constant 0 : index
    %11 = arith.index_cast %10 : i32 to index
    %c0_7 = arith.constant 0 : index
    %c0_8 = arith.constant 0 : index
    %12 = vector.load %arg2[%c0_6, %11, %c0_7, %c0_8] : memref<1x18x16x12xf32, #tpu.memory_space<vmem>>, vector<1x16x16x12xf32>
    %13 = vector.shape_cast %12 : vector<1x16x16x12xf32> to vector<16x16x12xf32>
    %14 = vector.shape_cast %13 : vector<16x16x12xf32> to vector<256x12xf32>
    %c12 = arith.constant 12 : index
    %c0_9 = arith.constant 0 : index
    %15 = vector.load %arg3[%c12, %c0_9] : memref<36x128xf32, #tpu.memory_space<vmem>>, vector<12x128xf32>
    %cst_10 = arith.constant dense<0.000000e+00> : vector<256x128xf32>
    %16 = tpu.matmul %14, %15, %cst_10 {dimension_numbers = #tpu.dot_dimension_numbers<[1], [0], [0], [1], [0, 0, 1, 1], [], []>} : vector<256x12xf32>, vector<12x128xf32>, vector<256x128xf32> -> vector<256x128xf32>
    %c0_11 = arith.constant 0 : index
    %c0_12 = arith.constant 0 : index
    %17 = vector.load %arg7[%c0_11, %c0_12] : memref<256x128xf32, #tpu.memory_space<vmem>>, vector<256x128xf32>
    %18 = arith.addf %17, %16 : vector<256x128xf32>
    %c0_13 = arith.constant 0 : index
    %c0_14 = arith.constant 0 : index
    %19 = vector.load %arg7[%c0_13, %c0_14] : memref<256x128xf32, #tpu.memory_space<vmem>>, vector<256x128xf32>
    tpu.vector_store %arg7[%c0_13, %c0_14], %18 {strides = array<i32>} : memref<256x128xf32, #tpu.memory_space<vmem>>, vector<256x128xf32>,
    %c2_i32 = arith.constant 2 : i32
    %20 = arith.addi %1, %c2_i32 : i32
    %c0_15 = arith.constant 0 : index
    %21 = arith.index_cast %20 : i32 to index
    %c0_16 = arith.constant 0 : index
    %c0_17 = arith.constant 0 : index
    %22 = vector.load %arg2[%c0_15, %21, %c0_16, %c0_17] : memref<1x18x16x12xf32, #tpu.memory_space<vmem>>, vector<1x16x16x12xf32>
    %23 = vector.shape_cast %22 : vector<1x16x16x12xf32> to vector<16x16x12xf32>
    %24 = vector.shape_cast %23 : vector<16x16x12xf32> to vector<256x12xf32>
    %c24 = arith.constant 24 : index
    %c0_18 = arith.constant 0 : index
    %25 = vector.load %arg3[%c24, %c0_18] : memref<36x128xf32, #tpu.memory_space<vmem>>, vector<12x128xf32>
    %cst_19 = arith.constant dense<0.000000e+00> : vector<256x128xf32>
    %26 = tpu.matmul %24, %25, %cst_19 {dimension_numbers = #tpu.dot_dimension_numbers<[1], [0], [0], [1], [0, 0, 1, 1], [], []>} : vector<256x12xf32>, vector<12x128xf32>, vector<256x128xf32> -> vector<256x128xf32>
    %c0_20 = arith.constant 0 : index
    %c0_21 = arith.constant 0 : index
    %27 = vector.load %arg7[%c0_20, %c0_21] : memref<256x128xf32, #tpu.memory_space<vmem>>, vector<256x128xf32>
    %28 = arith.addf %27, %26 : vector<256x128xf32>
    %c0_22 = arith.constant 0 : index
    %c0_23 = arith.constant 0 : index
    %29 = vector.load %arg7[%c0_22, %c0_23] : memref<256x128xf32, #tpu.memory_space<vmem>>, vector<256x128xf32>
    tpu.vector_store %arg7[%c0_22, %c0_23], %28 {strides = array<i32>} : memref<256x128xf32, #tpu.memory_space<vmem>>, vector<256x128xf32>,
    %c0_24 = arith.constant 0 : index
    %c0_25 = arith.constant 0 : index
    %30 = vector.load %arg7[%c0_24, %c0_25] : memref<256x128xf32, #tpu.memory_space<vmem>>, vector<256x128xf32>
    %31 = vector.shape_cast %30 : vector<256x128xf32> to vector<16x16x128xf32>
    %c0_26 = arith.constant 0 : index
    %c0_27 = arith.constant 0 : index
    %c0_28 = arith.constant 0 : index
    %c0_29 = arith.constant 0 : index
    %32 = vector.load %arg4[%c0_26, %c0_27, %c0_28, %c0_29] : memref<1x16x16x128xf32, #tpu.memory_space<vmem>>, vector<1x16x16x128xf32>
    %33 = vector.shape_cast %32 : vector<1x16x16x128xf32> to vector<16x16x128xf32>
    %34 = vector.shape_cast %31 : vector<16x16x128xf32> to vector<1x16x16x128xf32>
    tpu.vector_store %arg4[%c0_26, %c0_27, %c0_28, %c0_29], %34 {strides = array<i32>} : memref<1x16x16x128xf32, #tpu.memory_space<vmem>>, vector<1x16x16x128xf32>,
    %cst_30 = arith.constant dense<0.000000e+00> : vector<128xf32>
    %35 = vector.multi_reduction <add>, %30, %cst_30 [0] : vector<256x128xf32> to vector<128xf32>
    %36 = vector.shape_cast %35 : vector<128xf32> to vector<1x128xf32>
    %c0_31 = arith.constant 0 : index
    %c0_32 = arith.constant 0 : index
    %c0_33 = arith.constant 0 : index
    %c0_34 = arith.constant 0 : index
    %37 = vector.load %arg5[%c0_31, %c0_32, %c0_33, %c0_34] : memref<1x1x1x128xf32, #tpu.memory_space<vmem>>, vector<1x1x1x128xf32>
    %38 = vector.shape_cast %37 : vector<1x1x1x128xf32> to vector<1x128xf32>
    %39 = vector.shape_cast %36 : vector<1x128xf32> to vector<1x1x1x128xf32>
    tpu.vector_store %arg5[%c0_31, %c0_32, %c0_33, %c0_34], %39 {strides = array<i32>} : memref<1x1x1x128xf32, #tpu.memory_space<vmem>>, vector<1x1x1x128xf32>,
    %40 = arith.mulf %30, %30 : vector<256x128xf32>
    %cst_35 = arith.constant dense<0.000000e+00> : vector<128xf32>
    %41 = vector.multi_reduction <add>, %40, %cst_35 [0] : vector<256x128xf32> to vector<128xf32>
    %42 = vector.shape_cast %41 : vector<128xf32> to vector<1x128xf32>
    %c0_36 = arith.constant 0 : index
    %c0_37 = arith.constant 0 : index
    %c0_38 = arith.constant 0 : index
    %c0_39 = arith.constant 0 : index
    %43 = vector.load %arg6[%c0_36, %c0_37, %c0_38, %c0_39] : memref<1x1x1x128xf32, #tpu.memory_space<vmem>>, vector<1x1x1x128xf32>
    %44 = vector.shape_cast %43 : vector<1x1x1x128xf32> to vector<1x128xf32>
    %45 = vector.shape_cast %42 : vector<1x128xf32> to vector<1x1x1x128xf32>
    tpu.vector_store %arg6[%c0_36, %c0_37, %c0_38, %c0_39], %45 {strides = array<i32>} : memref<1x1x1x128xf32, #tpu.memory_space<vmem>>, vector<1x1x1x128xf32>,
    return
  }
  func.func @transform_0(%arg0: i32, %arg1: i32) -> (i32, i32, i32, i32) {
    %c0_i32 = arith.constant 0 : i32
    %c0_i32_0 = arith.constant 0 : i32
    %c0_i32_1 = arith.constant 0 : i32
    %c0_i32_2 = arith.constant 0 : i32
    return %arg0, %c0_i32, %c0_i32_0, %c0_i32_1 : i32, i32, i32, i32
  }
  func.func @transform_1(%arg0: i32, %arg1: i32) -> (i32, i32) {
    %c0_i32 = arith.constant 0 : i32
    %c0_i32_0 = arith.constant 0 : i32
    %c0_i32_1 = arith.constant 0 : i32
    return %c0_i32, %c0_i32_0 : i32, i32
  }
  func.func @transform_2(%arg0: i32, %arg1: i32) -> (i32, i32, i32, i32) {
    %c0_i32 = arith.constant 0 : i32
    %c0_i32_0 = arith.constant 0 : i32
    %c0_i32_1 = arith.constant 0 : i32
    return %arg0, %arg1, %c0_i32, %c0_i32_0 : i32, i32, i32, i32
  }
  func.func @transform_3(%arg0: i32, %arg1: i32) -> (i32, i32, i32, i32) {
    %c0_i32 = arith.constant 0 : i32
    %c0_i32_0 = arith.constant 0 : i32
    %c0_i32_1 = arith.constant 0 : i32
    return %arg0, %arg1, %c0_i32, %c0_i32_0 : i32, i32, i32, i32
  }
  func.func @transform_4(%arg0: i32, %arg1: i32) -> (i32, i32, i32, i32) {
    %c0_i32 = arith.constant 0 : i32
    %c0_i32_0 = arith.constant 0 : i32
    %c0_i32_1 = arith.constant 0 : i32
    return %arg0, %arg1, %c0_i32, %c0_i32_0 : i32, i32, i32, i32
  }
}

</mosaic_0001>

<bundles_post_ra>
// kernel: tpu_custom_call.1
= control target key start
LH: loop header
LB: loop body
LE: loop exit
PB: predicated region body
PF: predicated region fallthrough
CT: control target
= control target key end

     0   :  { %10 = vsyncpa [#allocation4], 0  ;;  %s2530_s0 = inlined_call_operand.vmem [shape: f32[2,18,16,12], index: 0, kind: input, shape index: {}]   ;;  %s2531_s1 = inlined_call_operand.vmem [shape: f32[36,128], index: 1, kind: input, shape index: {}]   ;;  %s2532_s2 = inlined_call_operand.hbm [shape: f32[2,16,16,128], index: 2, kind: output, shape index: {0}]   ;;  %s2533_s3 = inlined_call_operand.hbm [shape: f32[2,1,1,128], index: 3, kind: output, shape index: {1}]   ;;  %s2534_s4 = inlined_call_operand.hbm [shape: f32[2,1,1,128], index: 4, kind: output, shape index: {2}]  }
   0x1   :  { %12 = vsyncpa [#allocation4 + $0x1], 0 }
   0x2   :  { %13 = vsyncpa [#allocation6], 0 }
   0x3   :  { %15 = vsyncpa [#allocation6 + $0x1], 0  ;;  %s1986_s15 = smov 0   ;;  %s1988_s16 = smov 0  }
   0x4   :  { %s1990_s17 = smov 0   ;;  %s1992_s18 = smov 0  }
   0x5   :  { %s1994_s19 = smov 0   ;;  %s1996_s20 = smov 0  }
   0x6 LB: > { %s1569_s21 = sadd.s32 4294967295, %s1957_s20   ;;  %s1570_s22 = sadd.s32 4294967294, %s1957_s20   ;;  %s1957_s20 = sphi %s1996_s20, %s21_s20   ;;  %s1953_s19 = sphi %s1994_s19, %s2541_s19   ;;  %s1949_s18 = sphi %s1992_s18, %s2540_s18   ;;  %s1945_s17 = sphi %s1990_s17, %s2539_s17   ;;  %s1941_s16 = sphi %s1988_s16, %s2538_s16   ;;  %s1937_s15 = sphi %s1986_s15, %s2537_s15  }
   0x7   : > { %s33_s23 = sadd.s32 1, %s1953_s19  ;;  %s89_s24 = sadd.s32 1, %s1945_s17 }
   0x8   : > { %p35_p0 = scmp.ge.s32.totalorder %s33_s23, 2  ;;  %p99_p1 = scmp.ne.s32.totalorder %s1945_s17, %s1941_s16 }
   0x9   : > { %p100_p2 = scmp.eq.s32.totalorder %s1569_s21, 1  ;;  %p105_p3 = scmp.ne.s32.totalorder %s1941_s16, %s1937_s15 }
   0xa   : > { %s2543_s23 = smov (%p35_p0, %s33_s23), 0  ;;  %p106_p5 = scmp.eq.s32.totalorder %s1570_s22, 1 }
   0xb   : > { %p2028_p4 = por %p100_p2, %p99_p1  ;;  %s84_s26 = ssub.s32 %s1953_s19, %s2543_s23 }
   0xc   : > { %p1573_p6 = scmp.ge.s32.totalorder %s1957_s20, 1  ;;  %p87_p7 = scmp.eq.s32.totalorder %s84_s26, 0 }
   0xd   : > { %p2037_p8 = por %p106_p5, %p105_p3  ;;  %p191_p9 = scmp.lt.s32.totalorder %s1957_s20, 3 }
   0xe   : > { %s2043_s28 = scalar_select %p87_p7, %s1945_s17, %s89_s24  }
   0xf   : > { %p192_p10 = pnand %p1573_p6, %p191_p9 }
  0x10   : > { %p225_p11 = scmp.lt.s32.totalorder (!%p192_p10), %s1949_s18, 1  ;;  %s2210_s6 = sand.u32 (!%p192_p10), 1, %s1941_s16  }
  0x11   : > { %195 = sbr.rel (%p192_p10) target bundleno = 393 (0x189), region = 28  ;;  %s1574_s7 = sshll.u32 (!%p192_p10), %s2210_s6, 8 }
  0x12   : > { %s2224_s8 = scalar_lea.vmem (!%p192_p10), [#allocation3], %s1574_s7  ;;  %s1744_s9 = sshll.u32 (!%p192_p10), %s1949_s18, 8 }
  0x13   : > { %s1399_s12 = scalar_lea.hbm (!%p192_p10), %s2532_s2, %s1744_s9  ;;  %s1400_s13 = sshll.u32 (!%p192_p10), %s2224_s8, 4  ;;  %s2416_s13 = int_to_ptr.vmem [resolvable:$true] %s1400_s13 }
  0x14   : > { %s1402_s14 = sshll.u32 (!%p192_p10), %s1399_s12, 4  ;;  %s1839_s7 = scalar_lea.hbm (!%p192_p10), %s2532_s2, 512  ;;  %s1403_s14 = int_to_ptr.hbm [resolvable:$true] %s1402_s14 }
  0x16   : > { %v267_v0 = vld [vmem:[%s2531_s1 + $0x8] sm:$0xf]  ;;  %vm365_vm0 = vcmask 1043456   ;;  %v895_v1 = vld [vmem:[%s2531_s1 + $0x20] sm:$0xf]  ;;  %v894_v3 = vld [vmem:[%s2531_s1 + $0x18] sm:$0xff] }
  0x17   : > { %v266_v2 = vld [vmem:[%s2531_s1] sm:$0xff]  ;;  %1745 = vmatpush.msk.msra.mxu3 %vm365_vm0, %v267_v0  ;;  %1706 = vmatpush.msk.msra.mxu2 %vm365_vm0, %v895_v1  ;;  %v550_v4 = vld [vmem:[%s2531_s1 + $0x14] sm:$0xf]  ;;  %v549_v5 = vld [vmem:[%s2531_s1 + $0xc] sm:$0xff]  ;;  %s226_s24 = scalar_select %p225_p11, %s1949_s18, 1  ;;  %vm268_vm1 = vcmask 97280  }
  0x18   : > { %1576 = vmatpush.msk.msra.mxu0 %vm365_vm0, %v267_v0  ;;  %1641 = vmatpush.msk.msra.mxu1 %vm365_vm0, %v550_v4 }
  0x19   : > { %1746 = vmatpush.msra.mxu3 %v266_v2  ;;  %1010 = vmatpush.msra.mxu2 %v894_v3  ;;  %s1751_s26 = smul.u32 288, %s226_s24  ;;  %s1377_s24 = scalar_lea.sflag [#allocation4], %s2210_s6 }
  0x1a   : > { %384 = vmatpush.msra.mxu0 %v266_v2  ;;  %665 = vmatpush.msra.mxu1 %v549_v5 }
  0x1b   : > { %1747 = vmatpush.msk.msrb.mxu3 %vm365_vm0, %v550_v4  ;;  %s2073_s5 = scalar_lea.vmem %s2530_s0, %s1751_s26  ;;  %s1833_s26 = sshra.s32 %s1403_s14, 4  ;;  %s1834_s26 = int_to_ptr.hbm [resolvable:$true] %s1833_s26 }
  0x1c   : > { %v2076_v6 = vld [vmem:[%s2073_s5 + $0xc0] sm:$0xff]  ;;  %v1609_v9 = vld [vmem:[%s2073_s5 + $0x10] sm:$0xff]  ;;  %v2088_v10 = vld [vmem:[%s2073_s5 + $0xc8] sm:$0xff]  ;;  %s1835_s29 = scalar_lea.hbm %s1834_s26, 256  ;;  %p1840_p1 = scmp.lt.s32.totalorder %s1834_s26, %s2532_s2 }
  0x1d   : > { %1748 = vmatpush.msrb.mxu3 %v549_v5  ;;  %v1674_v7 = vld [vmem:[%s2073_s5 + $0x20] sm:$0xff]  ;;  %1642 = vmatmul.msk.f32.vlgmr.msra.gmra.mxu1 %vm268_vm1, %v1609_v9  ;;  %v1675_v11 = vld [vmem:[%s2073_s5 + $0x28] sm:$0xff]  ;;  %v1610_v13 = vld [vmem:[%s2073_s5 + $0x18] sm:$0xff]  ;;  %p1836_p12 = scmp.ne.s32.totalorder %s1834_s26, %s1835_s29  ;;  %p1841_p2 = scmp.lt.s32.totalorder %s1839_s7, %s1835_s29 }
  0x1e   : > { %v234_v8 = vld [vmem:[%s2073_s5] sm:$0xff]  ;;  %1601 = vmatmul.msk.f32.vlgmr.msra.gmra.mxu3 %vm268_vm1, %v2076_v6  ;;  %1707 = vmatmul.msk.f32.vlgmr.msra.gmra.mxu2 %vm268_vm1, %v1674_v7  ;;  %v235_v12 = vld [vmem:[%s2073_s5 + $0x8] sm:$0xff]  ;;  %v2099_v14 = vld [vmem:[%s2073_s5 + $0xd0] sm:$0xff] }
  0x1f   : > { %1577 = vmatmul.msk.f32.vlgmr.msra.gmra.mxu0 %vm268_vm1, %v234_v8  ;;  %1749 = vmatpush.msk.msra.mxu3 %vm365_vm0, %v895_v1  ;;  %v1676_v15 = vld [vmem:[%s2073_s5 + $0x30] sm:$0xff]  ;;  %v2108_v16 = vld [vmem:[%s2073_s5 + $0xd8] sm:$0xff]  ;;  %v2117_v18 = vld [vmem:[%s2073_s5 + $0xe0] sm:$0xff]  ;;  %p1837_p13 = pnand %p1836_p12, %p2028_p4  ;;  %p1842_p3 = por %p1841_p2, %p1840_p1 }
  0x20   : > { %v1677_v17 = vld [vmem:[%s2073_s5 + $0x38] sm:$0xff]  ;;  %v1678_v19 = vld [vmem:[%s2073_s5 + $0x40] sm:$0xff]  ;;  %v2126_v20 = vld [vmem:[%s2073_s5 + $0xe8] sm:$0xff] }
  0x21   : > { %1750 = vmatpush.msra.mxu3 %v894_v3  ;;  %v1679_v21 = vld [vmem:[%s2073_s5 + $0x48] sm:$0xff]  ;;  %v2135_v22 = vld [vmem:[%s2073_s5 + $0xf0] sm:$0xff]  ;;  %v2144_v24 = vld [vmem:[%s2073_s5 + $0xf8] sm:$0xff]  ;;  %p1838_p0 = pneg %p1837_p13 }
  0x22   : > { %v1680_v23 = vld [vmem:[%s2073_s5 + $0x50] sm:$0xff]  ;;  %v1681_v25 = vld [vmem:[%s2073_s5 + $0x58] sm:$0xff]  ;;  %v1682_v26 = vld [vmem:[%s2073_s5 + $0x60] sm:$0xff] }
  0x23   : > { %v1683_v27 = vld [vmem:[%s2073_s5 + $0x68] sm:$0xff]  ;;  %v1684_v28 = vld [vmem:[%s2073_s5 + $0x70] sm:$0xff]  ;;  %v1685_v29 = vld [vmem:[%s2073_s5 + $0x78] sm:$0xff]  ;;  %p1843_p5 = pnand %p1842_p3, %p1838_p0 }
  0x24   : > { %v1686_v30 = vld [vmem:[%s2073_s5 + $0x80] sm:$0xff]  ;;  %v1687_v31 = vld [vmem:[%s2073_s5 + $0x88] sm:$0xff]  ;;  %v1688_v33 = vld [vmem:[%s2073_s5 + $0x90] sm:$0xff] }
  0x25   : > { %1643 = vmatmul.msk.f32.gmra.mxu1 %vm268_vm1, %v1610_v13  ;;  %v2189_v32 = vld [vmem:[%s2073_s5 + $0x100] sm:$0xff]  ;;  %v2198_v34 = vld [vmem:[%s2073_s5 + $0x108] sm:$0xff]  ;;  %v1689_v35 = vld [vmem:[%s2073_s5 + $0x98] sm:$0xff] }
  0x26   : > { %1602 = vmatmul.msk.f32.gmra.mxu3 %vm268_vm1, %v2088_v10  ;;  %1708 = vmatmul.msk.f32.gmra.mxu2 %vm268_vm1, %v1675_v11  ;;  %v2207_v36 = vld [vmem:[%s2073_s5 + $0xa0] sm:$0xff]  ;;  %v2222_v43 = vld [vmem:[%s2073_s5 + $0xa8] sm:$0xff]  ;;  %v2236_v50 = vld [vmem:[%s2073_s5 + $0xb0] sm:$0xff] }
  0x27   : > { %1578 = vmatmul.msk.f32.gmra.mxu0 %vm268_vm1, %v235_v12  ;;  %v2249_v61 = vld [vmem:[%s2073_s5 + $0xb8] sm:$0xff] }
  0x2d   : > { %1644 = vmatmul.msk.f32.gmra.mxu1 %vm268_vm1, %v1674_v7 }
  0x2e   : > { %1603 = vmatmul.msk.f32.gmra.mxu3 %vm268_vm1, %v2099_v14  ;;  %1709 = vmatmul.msk.f32.gmra.mxu2 %vm268_vm1, %v1676_v15 }
  0x2f   : > { %1579 = vmatmul.msk.f32.gmra.mxu0 %vm268_vm1, %v1609_v9 }
  0x35   : > { %1645 = vmatmul.msk.f32.gmra.mxu1 %vm268_vm1, %v1675_v11 }
  0x36   : > { %1604 = vmatmul.msk.f32.gmra.mxu3 %vm268_vm1, %v2108_v16  ;;  %1710 = vmatmul.msk.f32.gmra.mxu2 %vm268_vm1, %v1677_v17 }
  0x37   : > { %1580 = vmatmul.msk.f32.gmra.mxu0 %vm268_vm1, %v1610_v13 }
  0x3d   : > { %1646 = vmatmul.msk.f32.gmra.mxu1 %vm268_vm1, %v1676_v15 }
  0x3e   : > { %1605 = vmatmul.msk.f32.gmra.mxu3 %vm268_vm1, %v2117_v18  ;;  %1711 = vmatmul.msk.f32.gmra.mxu2 %vm268_vm1, %v1678_v19 }
  0x3f   : > { %1581 = vmatmul.msk.f32.gmra.mxu0 %vm268_vm1, %v1674_v7 }
  0x45   : > { %1647 = vmatmul.msk.f32.gmra.mxu1 %vm268_vm1, %v1677_v17 }
  0x46   : > { %1606 = vmatmul.msk.f32.gmra.mxu3 %vm268_vm1, %v2126_v20  ;;  %1712 = vmatmul.msk.f32.gmra.mxu2 %vm268_vm1, %v1679_v21 }
  0x47   : > { %1582 = vmatmul.msk.f32.gmra.mxu0 %vm268_vm1, %v1675_v11 }
  0x4d   : > { %1648 = vmatmul.msk.f32.gmra.mxu1 %vm268_vm1, %v1678_v19 }
  0x4e   : > { %1607 = vmatmul.msk.f32.gmra.mxu3 %vm268_vm1, %v2135_v22  ;;  %1713 = vmatmul.msk.f32.gmra.mxu2 %vm268_vm1, %v1680_v23 }
  0x4f   : > { %1583 = vmatmul.msk.f32.gmra.mxu0 %vm268_vm1, %v1676_v15 }
  0x55   : > { %1649 = vmatmul.msk.f32.gmra.mxu1 %vm268_vm1, %v1679_v21 }
  0x56   : > { %1608 = vmatmul.msk.f32.gmra.mxu3 %vm268_vm1, %v2144_v24  ;;  %1714 = vmatmul.msk.f32.gmra.mxu2 %vm268_vm1, %v1681_v25 }
  0x57   : > { %1584 = vmatmul.msk.f32.gmra.mxu0 %vm268_vm1, %v1677_v17 }
  0x5d   : > { %1650 = vmatmul.msk.f32.gmra.mxu1 %vm268_vm1, %v1680_v23 }
  0x5e   : > { %1666 = vmatmul.msk.f32.vlgmr.msrb.gmra.mxu3 %vm268_vm1, %v2099_v14  ;;  %1715 = vmatmul.msk.f32.gmra.mxu2 %vm268_vm1, %v1682_v26 }
  0x5f   : > { %1585 = vmatmul.msk.f32.gmra.mxu0 %vm268_vm1, %v1678_v19 }
  0x65   : > { %1651 = vmatmul.msk.f32.gmra.mxu1 %vm268_vm1, %v1681_v25 }
  0x66   : > { %1667 = vmatmul.msk.f32.gmra.mxu3 %vm268_vm1, %v2108_v16  ;;  %1716 = vmatmul.msk.f32.gmra.mxu2 %vm268_vm1, %v1683_v27 }
  0x67   : > { %1586 = vmatmul.msk.f32.gmra.mxu0 %vm268_vm1, %v1679_v21 }
  0x6d   : > { %1652 = vmatmul.msk.f32.gmra.mxu1 %vm268_vm1, %v1682_v26 }
  0x6e   : > { %1668 = vmatmul.msk.f32.gmra.mxu3 %vm268_vm1, %v2117_v18  ;;  %1717 = vmatmul.msk.f32.gmra.mxu2 %vm268_vm1, %v1684_v28 }
  0x6f   : > { %1587 = vmatmul.msk.f32.gmra.mxu0 %vm268_vm1, %v1680_v23 }
  0x75   : > { %1653 = vmatmul.msk.f32.gmra.mxu1 %vm268_vm1, %v1683_v27 }
  0x76   : > { %1669 = vmatmul.msk.f32.gmra.mxu3 %vm268_vm1, %v2126_v20  ;;  %1718 = vmatmul.msk.f32.gmra.mxu2 %vm268_vm1, %v1685_v29 }
  0x77   : > { %1588 = vmatmul.msk.f32.gmra.mxu0 %vm268_vm1, %v1681_v25 }
  0x7d   : > { %1654 = vmatmul.msk.f32.gmra.mxu1 %vm268_vm1, %v1684_v28 }
  0x7e   : > { %1670 = vmatmul.msk.f32.gmra.mxu3 %vm268_vm1, %v2135_v22  ;;  %1719 = vmatmul.msk.f32.gmra.mxu2 %vm268_vm1, %v1686_v30 }
  0x7f   : > { %1589 = vmatmul.msk.f32.gmra.mxu0 %vm268_vm1, %v1682_v26 }
  0x85   : > { %1655 = vmatmul.msk.f32.gmra.mxu1 %vm268_vm1, %v1685_v29 }
  0x86   : > { %1671 = vmatmul.msk.f32.gmra.mxu3 %vm268_vm1, %v2144_v24  ;;  %1720 = vmatmul.msk.f32.gmra.mxu2 %vm268_vm1, %v1687_v31 }
  0x87   : > { %1590 = vmatmul.msk.f32.gmra.mxu0 %vm268_vm1, %v1683_v27 }
  0x8d   : > { %1656 = vmatmul.msk.f32.gmra.mxu1 %vm268_vm1, %v1686_v30 }
  0x8e   : > { %1672 = vmatmul.msk.f32.gmra.mxu3 %vm268_vm1, %v2189_v32  ;;  %1721 = vmatmul.msk.f32.gmra.mxu2 %vm268_vm1, %v1688_v33 }
  0x8f   : > { %1591 = vmatmul.msk.f32.gmra.mxu0 %vm268_vm1, %v1684_v28 }
  0x95   : > { %1657 = vmatmul.msk.f32.gmra.mxu1 %vm268_vm1, %v1687_v31 }
  0x96   : > { %1673 = vmatmul.msk.f32.gmra.mxu3 %vm268_vm1, %v2198_v34  ;;  %1722 = vmatmul.msk.f32.gmra.mxu2 %vm268_vm1, %v1689_v35 }
  0x97   : > { %1592 = vmatmul.msk.f32.gmra.mxu0 %vm268_vm1, %v1685_v29  ;;  %v1704_v29 = vld [vmem:[%s2073_s5 + $0x110] sm:$0xff] }
  0x9a   : > { %v667_v38 = vpop.f32.mrf.mxu1 }
  0x9c   : > { %v386_v37 = vpop.f32.mrf.mxu0 }
  0x9d   : > { %v795_v39 = vadd.f32 %v667_v38, %v386_v37  ;;  %1658 = vmatmul.msk.f32.gmra.mxu1 %vm268_vm1, %v1688_v33 }
  0x9e   : > { %1723 = vmatmul.msk.f32.gmra.mxu2 %vm268_vm1, %v2207_v36  ;;  %1731 = vmatmul.msk.f32.vlgmr.msra.gmra.mxu3 %vm268_vm1, %v2117_v18 }
  0x9f   : > { %1593 = vmatmul.msk.f32.gmra.mxu0 %vm268_vm1, %v1686_v30 }
  0xa1   : > { %v2219_v40 = vpop.f32.mrf.mxu3  ;;  %v1012_v41 = vpop.f32.mrf.mxu2 }
  0xa2   : > { %v1140_v42 = vadd.f32 %v1012_v41, %v795_v39  ;;  %v670_v45 = vpop.f32.mrf.mxu1  ;;  %v1705_v39 = vld [vmem:[%s2073_s5 + $0x118] sm:$0xff] }
  0xa4   : > { %1236 = vst [vmem:[%s2224_s8] sm:$0xff] %v1140_v42  ;;  %v389_v44 = vpop.f32.mrf.mxu0  ;;  %v1306_v51 = vmul.f32 %v1140_v42, %v1140_v42 }
  0xa5   : > { %v796_v46 = vadd.f32 %v670_v45, %v389_v44  ;;  %1659 = vmatmul.msk.f32.gmra.mxu1 %vm268_vm1, %v1689_v35 }
  0xa6   : > { %1724 = vmatmul.msk.f32.gmra.mxu2 %vm268_vm1, %v2222_v43  ;;  %1732 = vmatmul.msk.f32.gmra.mxu3 %vm268_vm1, %v2126_v20 }
  0xa7   : > { %1594 = vmatmul.msk.f32.gmra.mxu0 %vm268_vm1, %v1687_v31 }
  0xa9   : > { %v2233_v47 = vpop.f32.mrf.mxu3  ;;  %v1015_v48 = vpop.f32.mrf.mxu2 }
  0xaa   : > { %v1141_v49 = vadd.f32 %v1015_v48, %v796_v46  ;;  %v673_v55 = vpop.f32.mrf.mxu1 }
  0xac   : > { %1237 = vst [vmem:[%s2224_s8 + $0x8] sm:$0xff] %v1141_v49  ;;  %v1268_v52 = vadd.f32 %v1141_v49, %v1140_v42  ;;  %v1307_v53 = vmul.f32 %v1141_v49, %v1141_v49  ;;  %v392_v54 = vpop.f32.mrf.mxu0 }
  0xad   : > { %v797_v57 = vadd.f32 %v673_v55, %v392_v54  ;;  %1660 = vmatmul.msk.f32.gmra.mxu1 %vm268_vm1, %v2207_v36 }
  0xae   : > { %v1338_v56 = vadd.f32 %v1307_v53, %v1306_v51  ;;  %1725 = vmatmul.msk.f32.gmra.mxu2 %vm268_vm1, %v2236_v50  ;;  %1733 = vmatmul.msk.f32.gmra.mxu3 %vm268_vm1, %v2135_v22 }
  0xaf   : > { %1595 = vmatmul.msk.f32.gmra.mxu0 %vm268_vm1, %v1688_v33 }
  0xb1   : > { %v2246_v58 = vpop.f32.mrf.mxu3  ;;  %v1018_v59 = vpop.f32.mrf.mxu2 }
  0xb2   : > { %v1142_v60 = vadd.f32 %v1018_v59, %v797_v57  ;;  %v676_v1 = vpop.f32.mrf.mxu1 }
  0xb4   : > { %1238 = vst [vmem:[%s2224_s8 + $0x10] sm:$0xff] %v1142_v60  ;;  %v1269_v62 = vadd.f32 %v1268_v52, %v1142_v60  ;;  %v1308_v63 = vmul.f32 %v1142_v60, %v1142_v60  ;;  %v395_v0 = vpop.f32.mrf.mxu0 }
  0xb5   : > { %v798_v3 = vadd.f32 %v676_v1, %v395_v0  ;;  %1661 = vmatmul.msk.f32.gmra.mxu1 %vm268_vm1, %v2222_v43 }
  0xb6   : > { %v1339_v2 = vadd.f32 %v1338_v56, %v1308_v63  ;;  %1726 = vmatmul.msk.f32.gmra.mxu2 %vm268_vm1, %v2249_v61  ;;  %1734 = vmatmul.msk.f32.gmra.mxu3 %vm268_vm1, %v2144_v24 }
  0xb7   : > { %1596 = vmatmul.msk.f32.gmra.mxu0 %vm268_vm1, %v1689_v35 }
  0xb9   : > { %v2259_v4 = vpop.f32.mrf.mxu3  ;;  %v1021_v5 = vpop.f32.mrf.mxu2 }
  0xba   : > { %v1143_v7 = vadd.f32 %v1021_v5, %v798_v3  ;;  %v679_v12 = vpop.f32.mrf.mxu1 }
  0xbc   : > { %1239 = vst [vmem:[%s2224_s8 + $0x18] sm:$0xff] %v1143_v7  ;;  %v1270_v8 = vadd.f32 %v1269_v62, %v1143_v7  ;;  %v1309_v9 = vmul.f32 %v1143_v7, %v1143_v7  ;;  %v398_v11 = vpop.f32.mrf.mxu0 }
  0xbd   : > { %v799_v15 = vadd.f32 %v679_v12, %v398_v11  ;;  %1662 = vmatmul.msk.f32.gmra.mxu1 %vm268_vm1, %v2236_v50 }
  0xbe   : > { %v1340_v13 = vadd.f32 %v1339_v2, %v1309_v9  ;;  %1727 = vmatmul.msk.f32.gmra.mxu2 %vm268_vm1, %v2076_v6  ;;  %1735 = vmatmul.msk.f32.gmra.mxu3 %vm268_vm1, %v2189_v32 }
  0xbf   : > { %1597 = vmatmul.msk.f32.gmra.mxu0 %vm268_vm1, %v2207_v36 }
  0xc1   : > { %v2270_v17 = vpop.f32.mrf.mxu3  ;;  %v1024_v18 = vpop.f32.mrf.mxu2 }
  0xc2   : > { %v1144_v19 = vadd.f32 %v1024_v18, %v799_v15  ;;  %v682_v23 = vpop.f32.mrf.mxu1 }
  0xc4   : > { %1240 = vst [vmem:[%s2224_s8 + $0x20] sm:$0xff] %v1144_v19  ;;  %v1271_v20 = vadd.f32 %v1270_v8, %v1144_v19  ;;  %v1310_v21 = vmul.f32 %v1144_v19, %v1144_v19  ;;  %v401_v22 = vpop.f32.mrf.mxu0 }
  0xc5   : > { %v800_v25 = vadd.f32 %v682_v23, %v401_v22  ;;  %1663 = vmatmul.msk.f32.gmra.mxu1 %vm268_vm1, %v2249_v61 }
  0xc6   : > { %v1341_v24 = vadd.f32 %v1340_v13, %v1310_v21  ;;  %1728 = vmatmul.msk.f32.gmra.mxu2 %vm268_vm1, %v2088_v10  ;;  %1736 = vmatmul.msk.f32.gmra.mxu3 %vm268_vm1, %v2198_v34 }
  0xc7   : > { %1598 = vmatmul.msk.f32.gmra.mxu0 %vm268_vm1, %v2222_v43 }
  0xc9   : > { %v2281_v26 = vpop.f32.mrf.mxu3  ;;  %v1027_v27 = vpop.f32.mrf.mxu2 }
  0xca   : > { %v1145_v28 = vadd.f32 %v1027_v27, %v800_v25  ;;  %v685_v33 = vpop.f32.mrf.mxu1 }
  0xcc   : > { %1241 = vst [vmem:[%s2224_s8 + $0x28] sm:$0xff] %v1145_v28  ;;  %v1272_v30 = vadd.f32 %v1271_v20, %v1145_v28  ;;  %v1311_v31 = vmul.f32 %v1145_v28, %v1145_v28  ;;  %v404_v32 = vpop.f32.mrf.mxu0 }
  0xcd   : > { %v801_v35 = vadd.f32 %v685_v33, %v404_v32  ;;  %1664 = vmatmul.msk.f32.gmra.mxu1 %vm268_vm1, %v2076_v6 }
  0xce   : > { %v1342_v34 = vadd.f32 %v1341_v24, %v1311_v31  ;;  %1729 = vmatmul.msk.f32.gmra.mxu2 %vm268_vm1, %v2099_v14  ;;  %1737 = vmatmul.msk.f32.gmra.mxu3 %vm268_vm1, %v1704_v29 }
  0xcf   : > { %1599 = vmatmul.msk.f32.gmra.mxu0 %vm268_vm1, %v2236_v50 }
  0xd1   : > { %v2292_v36 = vpop.f32.mrf.mxu3  ;;  %v1030_v37 = vpop.f32.mrf.mxu2 }
  0xd2   : > { %v1146_v38 = vadd.f32 %v1030_v37, %v801_v35  ;;  %v688_v14 = vpop.f32.mrf.mxu1 }
  0xd4   : > { %1242 = vst [vmem:[%s2224_s8 + $0x30] sm:$0xff] %v1146_v38  ;;  %v1273_v41 = vadd.f32 %v1272_v30, %v1146_v38  ;;  %v1312_v42 = vmul.f32 %v1146_v38, %v1146_v38  ;;  %v407_v43 = vpop.f32.mrf.mxu0 }
  0xd5   : > { %v802_v45 = vadd.f32 %v688_v14, %v407_v43  ;;  %1665 = vmatmul.msk.f32.gmra.mxu1 %vm268_vm1, %v2088_v10 }
  0xd6   : > { %v1343_v44 = vadd.f32 %v1342_v34, %v1312_v42  ;;  %1730 = vmatmul.msk.f32.gmra.mxu2 %vm268_vm1, %v2108_v16  ;;  %1738 = vmatmul.msk.f32.gmra.mxu3 %vm268_vm1, %v1705_v39 }
  0xd7   : > { %1600 = vmatmul.msk.f32.gmra.mxu0 %vm268_vm1, %v2249_v61 }
  0xd9   : > { %v2303_v6 = vpop.f32.mrf.mxu3  ;;  %v1033_v46 = vpop.f32.mrf.mxu2 }
  0xda   : > { %v1147_v48 = vadd.f32 %v1033_v46, %v802_v45  ;;  %v691_v52 = vpop.f32.mrf.mxu1 }
  0xdc   : > { %1243 = vst [vmem:[%s2224_s8 + $0x38] sm:$0xff] %v1147_v48  ;;  %v1274_v49 = vadd.f32 %v1273_v41, %v1147_v48  ;;  %v1313_v50 = vmul.f32 %v1147_v48, %v1147_v48  ;;  %v410_v51 = vpop.f32.mrf.mxu0 }
  0xdd   : > { %v803_v53 = vadd.f32 %v691_v52, %v410_v51 }
  0xde   : > { %v1344_v16 = vadd.f32 %v1343_v44, %v1313_v50 }
  0xe1   : > { %v2306_v54 = vpop.f32.mrf.mxu3  ;;  %v1036_v55 = vpop.f32.mrf.mxu2 }
  0xe2   : > { %v1148_v56 = vadd.f32 %v1036_v55, %v803_v53  ;;  %v694_v60 = vpop.f32.mrf.mxu1 }
  0xe4   : > { %1244 = vst [vmem:[%s2224_s8 + $0x40] sm:$0xff] %v1148_v56  ;;  %v1275_v57 = vadd.f32 %v1274_v49, %v1148_v56  ;;  %v1314_v59 = vmul.f32 %v1148_v56, %v1148_v56  ;;  %v413_v10 = vpop.f32.mrf.mxu0 }
  0xe5   : > { %v804_v62 = vadd.f32 %v694_v60, %v413_v10 }
  0xe6   : > { %v1345_v61 = vadd.f32 %v1344_v16, %v1314_v59 }
  0xe9   : > { %v2309_v63 = vpop.f32.mrf.mxu3  ;;  %v1039_v0 = vpop.f32.mrf.mxu2 }
  0xea   : > { %v1149_v1 = vadd.f32 %v1039_v0, %v804_v62  ;;  %v697_v7 = vpop.f32.mrf.mxu1  ;;  %v819_v62 = vadd.f32 %v2306_v54, %v2219_v40 }
  0xec   : > { %1245 = vst [vmem:[%s2224_s8 + $0x48] sm:$0xff] %v1149_v1  ;;  %v1276_v2 = vadd.f32 %v1275_v57, %v1149_v1  ;;  %v1315_v3 = vmul.f32 %v1149_v1, %v1149_v1  ;;  %v416_v5 = vpop.f32.mrf.mxu0 }
  0xed   : > { %v805_v9 = vadd.f32 %v697_v7, %v416_v5 }
  0xee   : > { %v1346_v8 = vadd.f32 %v1345_v61, %v1315_v3 }
  0xf1   : > { %v2312_v11 = vpop.f32.mrf.mxu3  ;;  %v1042_v12 = vpop.f32.mrf.mxu2 }
  0xf2   : > { %v1150_v13 = vadd.f32 %v1042_v12, %v805_v9  ;;  %v700_v20 = vpop.f32.mrf.mxu1  ;;  %v820_v9 = vadd.f32 %v2309_v63, %v2233_v47 }
  0xf4   : > { %1246 = vst [vmem:[%s2224_s8 + $0x50] sm:$0xff] %v1150_v13  ;;  %v1277_v15 = vadd.f32 %v1276_v2, %v1150_v13  ;;  %v1316_v18 = vmul.f32 %v1150_v13, %v1150_v13  ;;  %v419_v19 = vpop.f32.mrf.mxu0 }
  0xf5   : > { %v806_v22 = vadd.f32 %v700_v20, %v419_v19  ;;  %v821_v20 = vadd.f32 %v2312_v11, %v2246_v58 }
  0xf6   : > { %v1347_v21 = vadd.f32 %v1346_v8, %v1316_v18 }
  0xf9   : > { %v2315_v23 = vpop.f32.mrf.mxu3  ;;  %v1045_v24 = vpop.f32.mrf.mxu2 }
  0xfa   : > { %v1151_v25 = vadd.f32 %v1045_v24, %v806_v22  ;;  %v703_v30 = vpop.f32.mrf.mxu1 }
  0xfc   : > { %1247 = vst [vmem:[%s2224_s8 + $0x58] sm:$0xff] %v1151_v25  ;;  %v1278_v27 = vadd.f32 %v1277_v15, %v1151_v25  ;;  %v1317_v28 = vmul.f32 %v1151_v25, %v1151_v25  ;;  %v422_v29 = vpop.f32.mrf.mxu0 }
  0xfd   : > { %v807_v32 = vadd.f32 %v703_v30, %v422_v29 }
  0xfe   : > { %v1348_v31 = vadd.f32 %v1347_v21, %v1317_v28  ;;  %v822_v28 = vadd.f32 %v2315_v23, %v2259_v4 }
 0x101   : > { %v2318_v33 = vpop.f32.mrf.mxu3  ;;  %v1048_v34 = vpop.f32.mrf.mxu2 }
 0x102   : > { %v1152_v35 = vadd.f32 %v1048_v34, %v807_v32  ;;  %v706_v41 = vpop.f32.mrf.mxu1 }
 0x104   : > { %1248 = vst [vmem:[%s2224_s8 + $0x60] sm:$0xff] %v1152_v35  ;;  %v2321_v37 = vadd.f32 %v1278_v27, %v1152_v35  ;;  %v1318_v38 = vmul.f32 %v1152_v35, %v1152_v35  ;;  %v425_v39 = vpop.f32.mrf.mxu0  ;;  %v823_v35 = vadd.f32 %v2318_v33, %v2270_v17 }
 0x105   : > { %v808_v43 = vadd.f32 %v706_v41, %v425_v39 }
 0x106   : > { %v2323_v42 = vadd.f32 %v1348_v31, %v1318_v38 }
 0x109   : > { %v2325_v14 = vpop.f32.mrf.mxu3  ;;  %v1051_v44 = vpop.f32.mrf.mxu2 }
 0x10a   : > { %v2327_v45 = vadd.f32 %v1051_v44, %v808_v43  ;;  %v709_v48 = vpop.f32.mrf.mxu1  ;;  %v824_v17 = vadd.f32 %v2325_v14, %v2281_v26 }
 0x10c   : > { %1249 = vst [vmem:[%s2224_s8 + $0x68] sm:$0xff] %v2327_v45  ;;  %v428_v46 = vpop.f32.mrf.mxu0  ;;  %v1319_v44 = vmul.f32 %v2327_v45, %v2327_v45  ;;  %v1280_v33 = vadd.f32 %v2321_v37, %v2327_v45 }
 0x10d   : > { %v809_v49 = vadd.f32 %v709_v48, %v428_v46 }
 0x111   : > { %v2331_v50 = vpop.f32.mrf.mxu3  ;;  %v1054_v51 = vpop.f32.mrf.mxu2 }
 0x112   : > { %v2333_v52 = vadd.f32 %v1054_v51, %v809_v49  ;;  %v712_v53 = vpop.f32.mrf.mxu1  ;;  %v1350_v49 = vadd.f32 %v2323_v42, %v1319_v44 }
 0x114   : > { %1250 = vst [vmem:[%s2224_s8 + $0x70] sm:$0xff] %v2333_v52  ;;  %v431_v16 = vpop.f32.mrf.mxu0  ;;  %v1320_v48 = vmul.f32 %v2333_v52, %v2333_v52 }
 0x115   : > { %v810_v55 = vadd.f32 %v712_v53, %v431_v16 }
 0x119   : > { %v2337_v56 = vpop.f32.mrf.mxu3  ;;  %v1057_v57 = vpop.f32.mrf.mxu2 }
 0x11a   : > { %v2339_v59 = vadd.f32 %v1057_v57, %v810_v55  ;;  %v715_v60 = vpop.f32.mrf.mxu1  ;;  %v1281_v55 = vadd.f32 %v1280_v33, %v2333_v52 }
 0x11c   : > { %1251 = vst [vmem:[%s2224_s8 + $0x78] sm:$0xff] %v2339_v59  ;;  %v434_v10 = vpop.f32.mrf.mxu0  ;;  %v1321_v51 = vmul.f32 %v2339_v59, %v2339_v59  ;;  %v1282_v14 = vadd.f32 %v1281_v55, %v2339_v59 }
 0x11d   : > { %v811_v61 = vadd.f32 %v715_v60, %v434_v10  ;;  %v1351_v60 = vadd.f32 %v1350_v49, %v1320_v48 }
 0x11f   : > { %v1352_v42 = vadd.f32 %v1351_v60, %v1321_v51 }
 0x121   : > { %v1060_v0 = vpop.f32.mrf.mxu2  ;;  %v1084_v1 = vpop.f32.mrf.mxu3 }
 0x122   : > { %v2345_v2 = vadd.f32 %v1060_v0, %v811_v61  ;;  %v2347_v3 = vadd.f32 %v1084_v1, %v819_v62  ;;  %v718_v7 = vpop.f32.mrf.mxu1  ;;  %v825_v1 = vadd.f32 %v2331_v50, %v2292_v36 }
 0x124   : > { %1252 = vst [vmem:[%s2224_s8 + $0x80] sm:$0xff] %v2345_v2  ;;  %v437_v5 = vpop.f32.mrf.mxu0  ;;  %v1322_v26 = vmul.f32 %v2345_v2, %v2345_v2  ;;  %v1283_v62 = vadd.f32 %v1282_v14, %v2345_v2 }
 0x125   : > { %1260 = vst [vmem:[%s2224_s8 + $0xc0] sm:$0xff] %v2347_v3  ;;  %v812_v8 = vadd.f32 %v718_v7, %v437_v5 }
 0x126   : > { %v1353_v0 = vadd.f32 %v1352_v42, %v1322_v26 }
 0x129   : > { %v1063_v12 = vpop.f32.mrf.mxu2  ;;  %v1087_v40 = vpop.f32.mrf.mxu3 }
 0x12a   : > { %v1157_v54 = vadd.f32 %v1063_v12, %v812_v8  ;;  %v2355_v13 = vadd.f32 %v1087_v40, %v820_v9  ;;  %v721_v18 = vpop.f32.mrf.mxu1 }
 0x12c   : > { %1253 = vst [vmem:[%s2224_s8 + $0x88] sm:$0xff] %v1157_v54  ;;  %v440_v15 = vpop.f32.mrf.mxu0  ;;  %v1323_v61 = vmul.f32 %v1157_v54, %v1157_v54  ;;  %v1284_v5 = vadd.f32 %v1283_v62, %v1157_v54 }
 0x12d   : > { %1261 = vst [vmem:[%s2224_s8 + $0xc8] sm:$0xff] %v2355_v13  ;;  %v813_v19 = vadd.f32 %v721_v18, %v440_v15 }
 0x12e   : > { %v1354_v59 = vadd.f32 %v1353_v0, %v1323_v61 }
 0x131   : > { %v1066_v21 = vpop.f32.mrf.mxu2  ;;  %v1090_v22 = vpop.f32.mrf.mxu3 }
 0x132   : > { %v1158_v47 = vadd.f32 %v1066_v21, %v813_v19  ;;  %v2362_v63 = vadd.f32 %v1090_v22, %v821_v20  ;;  %v724_v25 = vpop.f32.mrf.mxu1 }
 0x134   : > { %1254 = vst [vmem:[%s2224_s8 + $0x90] sm:$0xff] %v1158_v47  ;;  %v443_v24 = vpop.f32.mrf.mxu0  ;;  %v1324_v7 = vmul.f32 %v1158_v47, %v1158_v47  ;;  %v1285_v12 = vadd.f32 %v1284_v5, %v1158_v47 }
 0x135   : > { %1262 = vst [vmem:[%s2224_s8 + $0xd0] sm:$0xff] %v2362_v63  ;;  %v814_v27 = vadd.f32 %v724_v25, %v443_v24  ;;  %v826_v24 = vadd.f32 %v2337_v56, %v2303_v6  ;;  %v1330_v56 = vmul.f32 %v2347_v3, %v2347_v3 }
 0x136   : > { %v1355_v2 = vadd.f32 %v1354_v59, %v1324_v7 }
 0x139   : > { %v1069_v29 = vpop.f32.mrf.mxu2  ;;  %v1093_v30 = vpop.f32.mrf.mxu3 }
 0x13a   : > { %v1159_v31 = vadd.f32 %v1069_v29, %v814_v27  ;;  %v2369_v58 = vadd.f32 %v1093_v30, %v822_v28  ;;  %v727_v32 = vpop.f32.mrf.mxu1 }
 0x13c   : > { %1255 = vst [vmem:[%s2224_s8 + $0x98] sm:$0xff] %v1159_v31  ;;  %v446_v11 = vpop.f32.mrf.mxu0  ;;  %v1325_v40 = vmul.f32 %v1159_v31, %v1159_v31  ;;  %v1286_v19 = vadd.f32 %v1285_v12, %v1159_v31 }
 0x13d   : > { %1263 = vst [vmem:[%s2224_s8 + $0xd8] sm:$0xff] %v2369_v58  ;;  %v815_v34 = vadd.f32 %v727_v32, %v446_v11 }
 0x13e   : > { %v1356_v36 = vadd.f32 %v1355_v2, %v1325_v40 }
 0x141   : > { %v1072_v38 = vpop.f32.mrf.mxu2  ;;  %v1096_v39 = vpop.f32.mrf.mxu3 }
 0x142   : > { %v1160_v41 = vadd.f32 %v1072_v38, %v815_v34  ;;  %v2376_v43 = vadd.f32 %v1096_v39, %v823_v35  ;;  %v730_v23 = vpop.f32.mrf.mxu1 }
 0x144   : > { %1256 = vst [vmem:[%s2224_s8 + $0xa0] sm:$0xff] %v1160_v41  ;;  %v449_v4 = vpop.f32.mrf.mxu0  ;;  %v1326_v20 = vmul.f32 %v1160_v41, %v1160_v41  ;;  %v1287_v50 = vadd.f32 %v1286_v19, %v1160_v41 }
 0x145   : > { %1264 = vst [vmem:[%s2224_s8 + $0xe0] sm:$0xff] %v2376_v43  ;;  %v816_v46 = vadd.f32 %v730_v23, %v449_v4 }
 0x146   : > { %v1357_v25 = vadd.f32 %v1356_v36, %v1326_v20 }
 0x149   : > { %v1075_v16 = vpop.f32.mrf.mxu2  ;;  %v1099_v53 = vpop.f32.mrf.mxu3 }
 0x14a   : > { %v1161_v57 = vadd.f32 %v1075_v16, %v816_v46  ;;  %v2393_v10 = vadd.f32 %v1099_v53, %v824_v17  ;;  %v733_v45 = vpop.f32.mrf.mxu1 }
 0x14c   : > { %1257 = vst [vmem:[%s2224_s8 + $0xa8] sm:$0xff] %v1161_v57  ;;  %v452_v37 = vpop.f32.mrf.mxu0  ;;  %v1327_v54 = vmul.f32 %v1161_v57, %v1161_v57  ;;  %v1288_v27 = vadd.f32 %v1287_v50, %v1161_v57 }
 0x14d   : > { %1265 = vst [vmem:[%s2224_s8 + $0xe8] sm:$0xff] %v2393_v10  ;;  %v817_v52 = vadd.f32 %v733_v45, %v452_v37 }
 0x14e   : > { %v1358_v31 = vadd.f32 %v1357_v25, %v1327_v54 }
 0x151   : > { %v1078_v8 = vpop.f32.mrf.mxu2  ;;  %v1102_v9 = vpop.f32.mrf.mxu3 }
 0x152   : > { %v1162_v15 = vadd.f32 %v1078_v8, %v817_v52  ;;  %v2404_v18 = vadd.f32 %v1102_v9, %v825_v1  ;;  %v736_v22 = vpop.f32.mrf.mxu1 }
 0x154   : > { %1258 = vst [vmem:[%s2224_s8 + $0xb0] sm:$0xff] %v1162_v15  ;;  %v455_v21 = vpop.f32.mrf.mxu0  ;;  %v1328_v28 = vmul.f32 %v1162_v15, %v1162_v15  ;;  %v1289_v11 = vadd.f32 %v1288_v27, %v1162_v15 }
 0x155   : > { %1266 = vst [vmem:[%s2224_s8 + $0xf0] sm:$0xff] %v2404_v18  ;;  %v818_v47 = vadd.f32 %v736_v22, %v455_v21 }
 0x156   : > { %v1359_v35 = vadd.f32 %v1358_v31, %v1328_v28 }
 0x159   : > { %v1081_v29 = vpop.f32.mrf.mxu2  ;;  %v1105_v30 = vpop.f32.mrf.mxu3 }
 0x15a   : > { %v1163_v32 = vadd.f32 %v1081_v29, %v818_v47  ;;  %v1171_v34 = vadd.f32 %v1105_v30, %v826_v24 }
 0x15c   : > { %1259 = vst [vmem:[%s2224_s8 + $0xb8] sm:$0xff] %v1163_v32  ;;  %v1290_v38 = vadd.f32 %v1289_v11, %v1163_v32  ;;  %v1329_v6 = vmul.f32 %v1163_v32, %v1163_v32 }
 0x15d   : > { %1267 = vst [vmem:[%s2224_s8 + $0xf8] sm:$0xff] %v1171_v34 }
 0x15e   : > { %v1291_v39 = vadd.f32 %v1290_v38, %v2347_v3  ;;  %v1360_v41 = vadd.f32 %v1359_v35, %v1329_v6 }
 0x15f   : > { %1846 = shalt.err (!%p1843_p5)
}
 0x160   : > { %s1959_s10 = smov 128   ;;  %s1960_s11 = smov 8   ;;  %v1331_v3 = vmul.f32 %v2355_v13, %v2355_v13  ;;  %v1292_v4 = vadd.f32 %v1291_v39, %v2355_v13  ;;  %v1361_v23 = vadd.f32 %v1360_v41, %v1330_v56  ;;  %v1332_v44 = vmul.f32 %v2362_v63, %v2362_v63 }
 0x161   : > { %1752 = dma.vmem_to_hbm [thread:$0]  (%p2028_p4), %s2416_s13, 4096, %s1403_s14, %s1377_s24, %s1959_s10, %s1959_s10, %s1960_s11   ;;  %v1333_v17 = vmul.f32 %v2369_v58, %v2369_v58  ;;  %v1334_v51 = vmul.f32 %v2376_v43, %v2376_v43  ;;  %v1335_v13 = vmul.f32 %v2393_v10, %v2393_v10  ;;  %v1336_v57 = vmul.f32 %v2404_v18, %v2404_v18 }
 0x162   : > { %v1293_v46 = vadd.f32 %v1292_v4, %v2362_v63  ;;  %v1362_v48 = vadd.f32 %v1361_v23, %v1331_v3  ;;  %v1337_v14 = vmul.f32 %v1171_v34, %v1171_v34  ;;  %s1415_s14 = scalar_lea.hbm %s2533_s3, %s1949_s18  ;;  %s2459_s24 = sand.u32 1, %s1569_s21  }
 0x163   : > { %s1429_s30 = scalar_lea.hbm %s2534_s4, %s1949_s18  ;;  %s218_s5 = scalar_lea.vmem [#allocation5], %s2210_s6 }
 0x164   : > { %v1363_v33 = vadd.f32 %v1362_v48, %v1332_v44  ;;  %v1294_v49 = vadd.f32 %v1293_v46, %v2369_v58  ;;  %s2466_s7 = sshll.u32 %s218_s5, 4  ;;  %s2468_s9 = sshll.u32 %s1415_s14, 4  ;;  %s1418_s7 = int_to_ptr.vmem [resolvable:$true] %s2466_s7  ;;  %s1420_s9 = int_to_ptr.hbm [resolvable:$true] %s2468_s9 }
 0x165   : > { %s224_s8 = scalar_lea.vmem [#allocation7], %s2210_s6  ;;  %s2473_s10 = sshll.u32 %s1429_s30, 4  ;;  %s1434_s10 = int_to_ptr.hbm [resolvable:$true] %s2473_s10 }
 0x166   : > { %v1295_v16 = vadd.f32 %v1294_v49, %v2376_v43  ;;  %v1364_v53 = vadd.f32 %v1363_v33, %v1333_v17  ;;  %s2471_s21 = sshll.u32 %s224_s8, 4  ;;  %s1382_s18 = scalar_lea.sflag [#allocation6], %s2459_s24  ;;  %s1432_s21 = int_to_ptr.vmem [resolvable:$true] %s2471_s21 }
 0x167   : > { %s1861_s11 = sshra.s32 %s1420_s9, 4  ;;  %s1867_s14 = scalar_lea.hbm %s2533_s3, 2  ;;  %s1862_s11 = int_to_ptr.hbm [resolvable:$true] %s1861_s11 }
 0x168   : > { %v1296_v63 = vadd.f32 %v1295_v16, %v2393_v10  ;;  %v1365_v55 = vadd.f32 %v1364_v53, %v1334_v51  ;;  %s1863_s12 = scalar_lea.hbm %s1862_s11, 1  ;;  %p1868_p10 = scmp.lt.s32.totalorder %s1862_s11, %s2533_s3 }
 0x169   : > { %p1864_p6 = scmp.ne.s32.totalorder %s1862_s11, %s1863_s12  ;;  %p1869_p11 = scmp.lt.s32.totalorder %s1867_s14, %s1863_s12 }
 0x16a   : > { %v1297_v58 = vadd.f32 %v1296_v63, %v2404_v18  ;;  %v1366_v60 = vadd.f32 %v1365_v55, %v1335_v13 }
 0x16b   : > { %p1865_p7 = pnand %p1864_p6, %p2028_p4  ;;  %p1870_p12 = por %p1869_p11, %p1868_p10 }
 0x16c   : > { %v1298_v26 = vadd.f32 %v1297_v58, %v1171_v34  ;;  %v1367_v43 = vadd.f32 %v1366_v60, %v1336_v57 }
 0x16d   : > { %p1866_p9 = pneg %p1865_p7 }
 0x16e   : > { %v1299_v37 = vrot.slane %v1298_v26, 4  ;;  %v1368_v45 = vadd.f32 %v1367_v43, %v1337_v14 }
 0x16f   : > { %p1871_p13 = pnand %p1870_p12, %p1866_p9 }
 0x170   : > { %v1300_v42 = vadd.f32 %v1299_v37, %v1298_v26  ;;  %v1369_v61 = vrot.slane %v1368_v45, 4 }
 0x172   : > { %v1301_v62 = vrot.slane %v1300_v42, 2  ;;  %v1370_v52 = vadd.f32 %v1369_v61, %v1368_v45 }
 0x174   : > { %v1371_v10 = vrot.slane %v1370_v52, 2  ;;  %v1302_v0 = vadd.f32 %v1301_v62, %v1300_v42 }
 0x176   : > { %v1303_v1 = vrot.slane %v1302_v0, 1  ;;  %v1372_v5 = vadd.f32 %v1371_v10, %v1370_v52 }
 0x178   : > { %v1304_v7 = vadd.f32 %v1303_v1, %v1302_v0  ;;  %v1373_v59 = vrot.slane %v1372_v5, 1 }
 0x17a   : > { %1305 = vst [vmem:[%s218_s5] sm:$0x1] %v1304_v7  ;;  %v1374_v8 = vadd.f32 %v1373_v59, %v1372_v5 }
 0x17b   : > { %1874 = shalt.err (!%p1871_p13)
}
 0x17c   : > { %1753 = dma.vmem_to_hbm [thread:$0]  (%p2028_p4), %s1418_s7, 16, %s1420_s9, %s1382_s18   ;;  %1375 = vst [vmem:[%s224_s8] sm:$0x1] %v1374_v8 }
 0x17d   : > { %s1889_s24 = sshra.s32 %s1434_s10, 4  ;;  %s1895_s12 = scalar_lea.hbm %s2534_s4, 2  ;;  %s1890_s24 = int_to_ptr.hbm [resolvable:$true] %s1889_s24 }
 0x17e   : > { %s1891_s30 = scalar_lea.hbm %s1890_s24, 1  ;;  %p1896_p3 = scmp.lt.s32.totalorder %s1890_s24, %s2534_s4 }
 0x17f   : > { %p1892_p0 = scmp.ne.s32.totalorder %s1890_s24, %s1891_s30  ;;  %p1897_p5 = scmp.lt.s32.totalorder %s1895_s12, %s1891_s30 }
 0x181   : > { %p1893_p1 = pnand %p1892_p0, %p2028_p4  ;;  %p1898_p6 = por %p1897_p5, %p1896_p3 }
 0x183   : > { %p1894_p2 = pneg %p1893_p1 }
 0x185   : > { %p1899_p7 = pnand %p1898_p6, %p1894_p2 }
 0x187   : > { %1902 = shalt.err (!%p1899_p7)
}
 0x188   : > { %1754 = dma.vmem_to_hbm [thread:$0]  (%p2028_p4), %s1432_s21, 16, %s1434_s10, %s1382_s18  }
 0x189 PF: > { %p1768_p9 = scmp.ge.s32.totalorder %s1957_s20, 2  ;;  %s1445_s7 = sand.u32 1, %s1937_s15  }
 0x18a   : > { %s1446_s9 = scalar_lea.sflag [#allocation4], %s1445_s7 }
 0x18b   : > { %p1759_p10 = pnand %p1768_p9, %p2037_p8 }
 0x18d   : > { %p1760_p11 = pneg %p1759_p10 }
 0x18f   : > { %1928 = dma.done.wait (%p1760_p11), %s1446_s9, 4096  }
 0x190   : > { %1930 = vsyncadd (%p1760_p11), %s1446_s9, 4294963200  ;;  %s1455_s25 = sand.u32 1, %s1570_s22  }
 0x191   : > { %s1456_s8 = scalar_lea.sflag [#allocation6], %s1455_s25 }
 0x192   : > { %1932 = dma.done.wait (%p1760_p11), %s1456_s8, 32  }
 0x193   : > { %1934 = vsyncadd (%p1760_p11), %s1456_s8, 4294967264  ;;  %s21_s20 = sadd.s32 1, %s1957_s20   ;;  %s2537_s15 = smov %s1941_s16 }
 0x194   : > { %p18_p4 = scmp.ge.s32.totalorder %s21_s20, 4   ;;  %s2538_s16 = smov %s1945_s17 }
 0x195   : > { %s2539_s17 = smov %s2043_s28  ;;  %s2540_s18 = smov %s1953_s19 }
 0x196   : > { %s2541_s19 = smov %s2543_s23  ;;  %20 = sbr.rel (!%p18_p4) target bundleno = 6 (0x6), region = 98 }
 0x19b   :  { %1470 = vsyncpa [#allocation4], 1 }
 0x19c   :  { %1472 = vsyncpa [#allocation4 + $0x1], 1 }
 0x19d   :  { %1473 = vsyncpa [#allocation6], 1 }
 0x19e   :  { %1475 = vsyncpa [#allocation6 + $0x1], 1 }

</bundles_post_ra>
